<compile_context>
chip_gen: v5e
topology: v5e:2x2
jax: 0.10.0
libtpu: 0.0.40
codegen_flags: <defaults>
</compile_context>

<pallas_src>
import jax
import jax.numpy as jnp
from jax.experimental import pallas as pl
from jax.experimental.pallas import tpu as pltpu


def _round_up(x, m):
    return (x + m - 1) // m * m


def _sublane(dtype):
    # Minimum sublane multiple: 8 for 4-byte, 16 for 2-byte, 32 for 1-byte.
    return max(8, 32 // jnp.dtype(dtype).itemsize)


def _vmem_limit_bytes():
    # Generation-aware scoped-VMEM limit (v7x has only 64 MiB per TensorCore).
    try:
        cap = int(pltpu.get_tpu_info().vmem_capacity_bytes)
    except Exception:
        cap = 64 * 1024 * 1024  # conservative fallback (v7x per-TC VMEM)
    return min((cap * 3) // 4, 48 * 1024 * 1024)


# ----------------------------------------------------------------------------
# Kernels
# ----------------------------------------------------------------------------
def _dense_small_kernel(x_ref, w_ref, b_ref, o_ref):
    # Whole problem in one block: out = x @ w + b.
    o_ref[...] = (
        jnp.dot(x_ref[...], w_ref[...], preferred_element_type=jnp.float32)
        + b_ref[...].astype(jnp.float32)
    ).astype(o_ref.dtype)


def _dense_kernel_f32(x_ref, w_ref, b_ref, o_ref):
    # f32 output: accumulate directly into the resident output block
    # (output BlockSpec returns the same block index for every k).
    k = pl.program_id(2)

    @pl.when(k == 0)
    def _init():
        # Fold the bias into the accumulator instead of an epilogue add.
        o_ref[...] = jnp.broadcast_to(b_ref[...], o_ref.shape)

    o_ref[...] += jnp.dot(
        x_ref[...], w_ref[...], preferred_element_type=jnp.float32
    )


def _dense_kernel_acc(x_ref, w_ref, b_ref, o_ref, acc_ref):
    # Narrow output dtypes: keep an f32 accumulator scratch, write once at end.
    k = pl.program_id(2)

    @pl.when(k == 0)
    def _init():
        acc_ref[...] = jnp.broadcast_to(
            b_ref[...].astype(jnp.float32), acc_ref.shape
        )

    acc_ref[...] += jnp.dot(
        x_ref[...], w_ref[...], preferred_element_type=jnp.float32
    )

    @pl.when(k == pl.num_programs(2) - 1)
    def _finalize():
        o_ref[...] = acc_ref[...].astype(o_ref.dtype)


# ----------------------------------------------------------------------------
# One-time parameter preparation (outside the per-call path)
# ----------------------------------------------------------------------------
def prepare_dense_params(weight, bias, *, tn_max=512, tk_max=1024):
    """Transpose W (out,in)->(in,out) and zero-pad W / bias to lane-aligned
    tile multiples once, so dense_forward never re-pads the parameters."""
    N, K = weight.shape
    tn = min(tn_max, _round_up(N, 128))
    tk = min(tk_max, _round_up(K, 128))
    K_p = _round_up(K, tk)
    N_p = _round_up(N, tn)

    wt = weight.T  # (K, N): contract x lanes against W sublanes (no XLU xpose)
    if K_p != K or N_p != N:
        wt = jnp.pad(wt, ((0, K_p - K), (0, N_p - N)))
    b = bias if N_p == N else jnp.pad(bias, (0, N_p - N))

    return {
        "wt_p": wt,                 # (K_p, N_p)
        "b2d_p": b.reshape(1, N_p),  # (1, N_p)
        "tn": tn, "tk": tk,
        "K": K, "N": N, "K_p": K_p, "N_p": N_p,
    }


# ----------------------------------------------------------------------------
# Forward
# ----------------------------------------------------------------------------
def dense_forward(x, params, *, tm_max=512):
    """Equivalent of nn.Linear(input_dim, output_dim)(x)[..., None, None]."""
    *lead, K = x.shape
    assert K == params["K"], (K, params["K"])
    N, K_p, N_p = params["N"], params["K_p"], params["N_p"]
    tn, tk = params["tn"], params["tk"]
    wt_p, b2d_p = params["wt_p"], params["b2d_p"]

    x2d = x.reshape(-1, K)
    M = x2d.shape[0]
    out_dtype = x.dtype
    sub = _sublane(out_dtype)
    dsize = jnp.dtype(out_dtype).itemsize
    vmem_limit = _vmem_limit_bytes()

    # --- small-shape fast path: one block, no reduction grid, no scratch -----
    M_p8 = _round_up(max(M, 1), sub)
    small = (
        K_p == tk and N_p == tn and M_p8 <= tm_max
        and (M_p8 * K_p + K_p * N_p + M_p8 * N_p) * dsize <= (8 << 20)
    )
    if small:
        x_p = x2d
        if M_p8 != M or K_p != K:
            x_p = jnp.pad(x2d, ((0, M_p8 - M), (0, K_p - K)))
        out2d = pl.pallas_call(
            _dense_small_kernel,
            out_shape=jax.ShapeDtypeStruct((M_p8, N_p), out_dtype),
            grid=(1,),
            in_specs=[
                pl.BlockSpec((M_p8, K_p), lambda i: (0, 0)),
                pl.BlockSpec((K_p, N_p), lambda i: (0, 0)),
                pl.BlockSpec((1, N_p), lambda i: (0, 0)),
            ],
            out_specs=pl.BlockSpec((M_p8, N_p), lambda i: (0, 0)),
            compiler_params=pltpu.CompilerParams(
                vmem_limit_bytes=vmem_limit),
        )(x_p, wt_p, b2d_p)
        out2d = out2d[:M, :N]
        return out2d.reshape(*lead, N, 1, 1)

    # --- tiled (i, j, k) path -------------------------------------------------
    tm = min(tm_max, _round_up(M, sub))

    # v7x megacore: ensure at least one "parallel" axis has >= 2 blocks so the
    # second TensorCore gets work (harmless on single-TC chips).
    if pl.cdiv(M, tm) == 1 and pl.cdiv(N_p, tn) == 1:
        if tn % 256 == 0:
            tn //= 2
        elif tm % (2 * sub) == 0:
            tm //= 2

    M_p = _round_up(M, tm)
    x_p = x2d
    if M_p != M or K_p != K:
        x_p = jnp.pad(x2d, ((0, M_p - M), (0, K_p - K)))

    grid = (M_p // tm, N_p // tn, K_p // tk)
    n_i, n_j = grid[0], grid[1]

    if out_dtype == jnp.float32:
        kernel = _dense_kernel_f32
        scratch = []
    else:
        kernel = _dense_kernel_acc
        scratch = [pltpu.VMEM((tm, tn), jnp.float32)]

    out2d = pl.pallas_call(
        kernel,
        out_shape=jax.ShapeDtypeStruct((M_p, N_p), out_dtype),
        grid_spec=pltpu.PrefetchScalarGridSpec(
            num_scalar_prefetch=0,
            grid=grid,
            in_specs=[
                # activations: (tm, tk) tile at block (i, k)
                pl.BlockSpec((tm, tk), lambda i, j, k: (i, k)),
                # weight, pre-transposed (K, N): (tk, tn) tile at block (k, j)
                pl.BlockSpec((tk, tn), lambda i, j, k: (k, j)),
                # bias: (1, tn) tile at block (0, j)
                pl.BlockSpec((1, tn), lambda i, j, k: (0, j)),
            ],
            # Output block resident across k (the reduction axis).
            out_specs=pl.BlockSpec((tm, tn), lambda i, j, k: (i, j)),
            scratch_shapes=scratch,
        ),
        compiler_params=pltpu.CompilerParams(
            dimension_semantics=("parallel", "parallel", "arbitrary"),
            vmem_limit_bytes=vmem_limit,
        ),
        cost_estimate=pl.CostEstimate(
            flops=2 * M_p * N_p * K_p,
            transcendentals=0,
            # Account for operand re-streaming across the grid.
            bytes_accessed=(M_p * K_p * n_j + K_p * N_p * n_i
                            + M_p * N_p + N_p * n_i) * dsize,
        ),
    )(x_p, wt_p, b2d_p)

    out2d = out2d[:M, :N]
    return out2d.reshape(*lead, N, 1, 1)


# ----------------------------------------------------------------------------
# Demo / self-test
# ----------------------------------------------------------------------------
if __name__ == "__main__":
    key = jax.random.PRNGKey(0)
    kx, kw, kb, kx2, kx3 = jax.random.split(key, 5)

    batch = 2
    input_dim = 32
    output_dim = 64

    # nn.Linear-style uniform(-1/sqrt(in), 1/sqrt(in)) init.
    bound = 1.0 / (input_dim ** 0.5)
    weight = jax.random.uniform(
        kw, (output_dim, input_dim), minval=-bound, maxval=bound,
        dtype=jnp.float32)
    bias = jax.random.uniform(
        kb, (output_dim,), minval=-bound, maxval=bound, dtype=jnp.float32)

    # One-time parameter prep (transpose + pad happens here, not per call).
    params = prepare_dense_params(weight, bias)

    # 1) Small shape -> single-block fast path.
    x = jax.random.normal(kx, (batch, input_dim), dtype=jnp.float32)
    out = jax.block_until_ready(dense_forward(x, params))
    ref = (x @ weight.T + bias)[..., None, None]
    assert out.shape == (batch, output_dim, 1, 1), out.shape
    assert jnp.allclose(out, ref, atol=1e-5, rtol=1e-5)

    # 2) Leading dims + non-divisible M, still fast path.
    x_big = jax.random.normal(kx2, (3, 129, input_dim), dtype=jnp.float32)
    out_big = jax.block_until_ready(dense_forward(x_big, params))
    ref_big = (x_big @ weight.T + bias)[..., None, None]
    assert out_big.shape == (3, 129, output_dim, 1, 1), out_big.shape
    assert jnp.allclose(out_big, ref_big, atol=1e-5, rtol=1e-5)

    # 3) Enough rows to exercise the tiled (i, j, k) path.
    x_tok = jax.random.normal(kx3, (1040, input_dim), dtype=jnp.float32)
    out_tok = jax.block_until_ready(dense_forward(x_tok, params))
    ref_tok = (x_tok @ weight.T + bias)[..., None, None]
    assert out_tok.shape == (1040, output_dim, 1, 1), out_tok.shape
    assert jnp.allclose(out_tok, ref_tok, atol=1e-5, rtol=1e-5)

    print("KERNEL_OK")
</pallas_src>

<mosaic_0001>
module attributes {stable_mosaic.version = 11 : i64} {
  func.func @_dense_small_kernel(%arg0: i32, %arg1: memref<8x128xf32, #tpu.memory_space<vmem>>, %arg2: memref<128x128xf32, #tpu.memory_space<vmem>>, %arg3: memref<1x128xf32, #tpu.memory_space<vmem>>, %arg4: memref<8x128xf32, #tpu.memory_space<vmem>>) attributes {dimension_semantics = [#tpu.dimension_semantics<arbitrary>], iteration_bounds = array<i64: 1>, scalar_prefetch = 0 : i64, scratch_operands = 0 : i64, tpu.core_type = #tpu.core_type<tc>, window_params = [{pipeline_mode = #tpu.pipeline_mode<synchronous>, transform_indices = @transform_0, window_bounds = array<i64: 8, 128>}, {pipeline_mode = #tpu.pipeline_mode<synchronous>, transform_indices = @transform_1, window_bounds = array<i64: 128, 128>}, {pipeline_mode = #tpu.pipeline_mode<synchronous>, transform_indices = @transform_2, window_bounds = array<i64: 1, 128>}, {pipeline_mode = #tpu.pipeline_mode<synchronous>, transform_indices = @transform_3, window_bounds = array<i64: 8, 128>}]} {
    %c0 = arith.constant 0 : index
    %c0_0 = arith.constant 0 : index
    %0 = vector.load %arg1[%c0, %c0_0] : memref<8x128xf32, #tpu.memory_space<vmem>>, vector<8x128xf32>
    %c0_1 = arith.constant 0 : index
    %c0_2 = arith.constant 0 : index
    %1 = vector.load %arg2[%c0_1, %c0_2] : memref<128x128xf32, #tpu.memory_space<vmem>>, vector<128x128xf32>
    %cst = arith.constant dense<0.000000e+00> : vector<8x128xf32>
    %2 = tpu.matmul %0, %1, %cst {dimension_numbers = #tpu.dot_dimension_numbers<[1], [0], [0], [1], [0, 0, 1, 1], [], []>} : vector<8x128xf32>, vector<128x128xf32>, vector<8x128xf32> -> vector<8x128xf32>
    %c0_3 = arith.constant 0 : index
    %c0_4 = arith.constant 0 : index
    %3 = vector.load %arg3[%c0_3, %c0_4] : memref<1x128xf32, #tpu.memory_space<vmem>>, vector<1x128xf32>
    %4 = vector.broadcast %3 : vector<1x128xf32> to vector<8x128xf32>
    %5 = arith.addf %2, %4 : vector<8x128xf32>
    %c0_5 = arith.constant 0 : index
    %c0_6 = arith.constant 0 : index
    %6 = vector.load %arg4[%c0_5, %c0_6] : memref<8x128xf32, #tpu.memory_space<vmem>>, vector<8x128xf32>
    tpu.vector_store %arg4[%c0_5, %c0_6], %5 {strides = array<i32>} : memref<8x128xf32, #tpu.memory_space<vmem>>, vector<8x128xf32>,
    return
  }
  func.func @transform_0(%arg0: i32) -> (i32, i32) {
    %c0_i32 = arith.constant 0 : i32
    %c0_i32_0 = arith.constant 0 : i32
    %c0_i32_1 = arith.constant 0 : i32
    return %c0_i32, %c0_i32_0 : i32, i32
  }
  func.func @transform_1(%arg0: i32) -> (i32, i32) {
    %c0_i32 = arith.constant 0 : i32
    %c0_i32_0 = arith.constant 0 : i32
    %c0_i32_1 = arith.constant 0 : i32
    return %c0_i32, %c0_i32_0 : i32, i32
  }
  func.func @transform_2(%arg0: i32) -> (i32, i32) {
    %c0_i32 = arith.constant 0 : i32
    %c0_i32_0 = arith.constant 0 : i32
    %c0_i32_1 = arith.constant 0 : i32
    return %c0_i32, %c0_i32_0 : i32, i32
  }
  func.func @transform_3(%arg0: i32) -> (i32, i32) {
    %c0_i32 = arith.constant 0 : i32
    %c0_i32_0 = arith.constant 0 : i32
    %c0_i32_1 = arith.constant 0 : i32
    return %c0_i32, %c0_i32_0 : i32, i32
  }
}

</mosaic_0001>

<bundles_post_ra>
// kernel: tpu_custom_call.1
= control target key start
LH: loop header
LB: loop body
LE: loop exit
PB: predicated region body
PF: predicated region fallthrough
CT: control target
= control target key end

     0   :  { %8 = vsyncpa [#allocation3], 0  ;;  %s226_s0 = inlined_call_operand.hbm [shape: f32[8,128], index: 0, kind: input, shape index: {}]   ;;  %s227_s1 = inlined_call_operand.hbm [shape: f32[128,128], index: 1, kind: input, shape index: {}]   ;;  %s228_s2 = inlined_call_operand.vmem [shape: f32[1,128], index: 2, kind: input, shape index: {}]   ;;  %s229_s3 = inlined_call_operand.hbm [shape: f32[8,128], index: 3, kind: output, shape index: {}]  }
   0x1   :  { %9 = vsyncpa [#allocation6], 0 }
   0x2   :  { %10 = vsyncpa [#allocation4], 0  ;;  %s16_s14 = sshll.u32 %s226_s0, 4  ;;  %s189_s15 = smov [#allocation2]   ;;  %s17_s14 = int_to_ptr.hbm [resolvable:$true] %s16_s14 }
   0x3   :  { %s18_s16 = sshll.u32 %s189_s15, 4  ;;  %s26_s19 = sshll.u32 %s227_s1, 4  ;;  %s19_s16 = int_to_ptr.vmem [resolvable:$true] %s18_s16  ;;  %s27_s19 = int_to_ptr.hbm [resolvable:$true] %s26_s19 }
   0x4   :  { %21 = dma.hbm_to_vmem [thread:$0]  %s17_s14, 128, %s19_s16, [#allocation3]  }
   0x5   :  { %s190_s20 = smov [#allocation5]   ;;  %s191_s22 = smov 128  }
   0x6   :  { %s28_s21 = sshll.u32 %s190_s20, 4  ;;  %s192_s23 = smov 8   ;;  %s29_s21 = int_to_ptr.vmem [resolvable:$true] %s28_s21 }
   0x7   :  { %34 = dma.hbm_to_vmem [thread:$0]  %s27_s19, 2048, %s29_s21, [#allocation6], %s191_s22, %s191_s22, %s192_s23  }
   0x8   :  { %183 = dma.done.wait [#allocation3], 128  }
   0x9   :  { %184 = vsyncadd [#allocation3], 4294967168 }
   0xa   :  { %185 = dma.done.wait [#allocation6], 2048  }
   0xb   :  { %186 = vsyncadd [#allocation6], 4294965248  ;;  %v61_v0 = vld [vmem:[#allocation5 + $0x78] sm:$0xff]  ;;  %v60_v1 = vld [vmem:[#allocation5 + $0x70] sm:$0xff]  ;;  %s193_s24 = smov [#allocation7]   ;;  %s94_s28 = sshll.u32 %s229_s3, 4  ;;  %s95_s28 = int_to_ptr.hbm [resolvable:$true] %s94_s28 }
   0xc   :  { %66 = vmatpush.msra.mxu0 %v61_v0  ;;  %v59_v2 = vld [vmem:[#allocation5 + $0x68] sm:$0xff]  ;;  %v58_v3 = vld [vmem:[#allocation5 + $0x60] sm:$0xff]  ;;  %v57_v4 = vld [vmem:[#allocation5 + $0x58] sm:$0xff]  ;;  %s92_s25 = sshll.u32 %s193_s24, 4  ;;  %s93_s25 = int_to_ptr.vmem [resolvable:$true] %s92_s25 }
   0xd   :  { %v56_v5 = vld [vmem:[#allocation5 + $0x50] sm:$0xff]  ;;  %v55_v6 = vld [vmem:[#allocation5 + $0x48] sm:$0xff]  ;;  %v54_v7 = vld [vmem:[#allocation5 + $0x40] sm:$0xff] }
   0xe   :  { %67 = vmatpush.msra.mxu0 %v60_v1  ;;  %v53_v8 = vld [vmem:[#allocation5 + $0x38] sm:$0xff]  ;;  %v52_v9 = vld [vmem:[#allocation5 + $0x30] sm:$0xff]  ;;  %v51_v10 = vld [vmem:[#allocation5 + $0x28] sm:$0xff] }
   0xf   :  { %v50_v11 = vld [vmem:[#allocation5 + $0x20] sm:$0xff]  ;;  %v49_v12 = vld [vmem:[#allocation5 + $0x18] sm:$0xff]  ;;  %v48_v13 = vld [vmem:[#allocation5 + $0x10] sm:$0xff] }
  0x10   :  { %68 = vmatpush.msra.mxu0 %v59_v2  ;;  %v47_v14 = vld [vmem:[#allocation5 + $0x8] sm:$0xff]  ;;  %v46_v15 = vld [vmem:[#allocation5] sm:$0xff]  ;;  %v45_v16 = vld [vmem:[#allocation2] sm:$0xff] }
  0x11   :  { %v110_v17 = vld [vmem:[%s228_s2] ss:$0 sm:$0xff] }
  0x12   :  { %69 = vmatpush.msra.mxu0 %v58_v3 }
  0x14   :  { %70 = vmatpush.msra.mxu0 %v57_v4 }
  0x16   :  { %71 = vmatpush.msra.mxu0 %v56_v5 }
  0x18   :  { %72 = vmatpush.msra.mxu0 %v55_v6 }
  0x1a   :  { %73 = vmatpush.msra.mxu0 %v54_v7 }
  0x1c   :  { %74 = vmatpush.msra.mxu0 %v53_v8 }
  0x1e   :  { %75 = vmatpush.msra.mxu0 %v52_v9 }
  0x20   :  { %76 = vmatpush.msra.mxu0 %v51_v10 }
  0x22   :  { %77 = vmatpush.msra.mxu0 %v50_v11 }
  0x24   :  { %78 = vmatpush.msra.mxu0 %v49_v12 }
  0x26   :  { %79 = vmatpush.msra.mxu0 %v48_v13 }
  0x28   :  { %80 = vmatpush.msra.mxu0 %v47_v14 }
  0x2a   :  { %81 = vmatpush.msra.mxu0 %v46_v15 }
  0x2b   :  { %82 = vmatmul.f32.vlgmr.msra.gmra.mxu0 %v45_v16 }
  0xa8   :  { %v83_v18 = vpop.f32.mrf.mxu0 }
  0xa9   :  { %v84_v19 = vadd.f32 %v110_v17, %v83_v18 }
  0xab   :  { %86 = vst [vmem:[#allocation7] sm:$0xff] %v84_v19 }
  0xac   :  { %97 = dma.vmem_to_hbm [thread:$0]  %s93_s25, 128, %s95_s28, [#allocation4]  }
  0xad   :  { %187 = dma.done.wait [#allocation4], 128  }
  0xae   :  { %188 = vsyncadd [#allocation4], 4294967168 }
  0xaf   :  { %102 = vsyncpa [#allocation3], 1 }
  0xb0   :  { %103 = vsyncpa [#allocation6], 1 }
  0xb1   :  { %104 = vsyncpa [#allocation4], 1 }

</bundles_post_ra>
